<compile_context>
chip_gen: v7x
topology: tpu7x:2x2x1
jax: 0.10.0
libtpu: 0.0.40
codegen_flags: <defaults>
</compile_context>

<pallas_src>
import functools
import math

import jax
import jax.numpy as jnp
from jax.experimental import pallas as pl
from jax.experimental.pallas import tpu as pltpu

IGNORE_INDEX = 255
_MAX_TILE_ROWS = 2048          # 256K pixels / step; keeps temps well-bounded


def _sublane_multiple(dtype):
    # Sub-32-bit dtypes pack along sublanes: f32 -> 8, bf16 -> 16, int8 -> 32.
    return 8 * max(1, 4 // jnp.dtype(dtype).itemsize)


def _vmem_config():
    """(tile budget bytes, vmem_limit_bytes, TCs sharing HBM) per generation."""
    try:
        vmem_cap = int(pltpu.get_tpu_info().vmem_capacity_bytes)
    except Exception:
        vmem_cap = 64 * 1024 * 1024            # conservative fallback
    if vmem_cap >= 100 * 1024 * 1024:          # v5e / v6e: 128 MiB VMEM, 1 TC
        return 56 * 1024 * 1024, 96 * 1024 * 1024, 1
    # v7x-class: 64 MiB per TC, 2 TCs per chip share HBM bandwidth.
    return 24 * 1024 * 1024, 32 * 1024 * 1024, 2


def _make_focal_kernel(C, tile_rows, r_total, gamma,
                       split, tiles_per_part, full_cover):
    gamma = float(gamma)

    def focal_factor(pt):
        if gamma == 0.0:
            return None                          # (1 - pt)**0 == 1
        omp = jnp.maximum(1.0 - pt, 0.0)         # clamp fp noise (pt > 1)
        if gamma == int(gamma) and 1.0 <= gamma <= 8.0:
            f = omp
            for _ in range(int(gamma) - 1):      # repeated multiply: VPU only
                f = f * omp
            return f
        # non-integer gamma: guard pow at omp == 0 against NaN surprises
        return jnp.where(omp > 0.0, omp ** gamma, 0.0)

    def kernel(x_ref, t_ref, o_ref, acc_ref):
        # x_ref: (C, tile_rows, 128) logits; t_ref: (tile_rows, 128) targets
        i = pl.program_id(1)

        @pl.when(i == 0)
        def _():
            acc_ref[...] = jnp.zeros_like(acc_ref)

        t = t_ref[...].astype(jnp.int32)
        valid = t != IGNORE_INDEX

        if not full_cover:
            # Some tile is ragged (or duplicated by the v7x split): mask rows
            # beyond r_total so Pallas-padded / re-read garbage contributes 0.
            if split > 1:
                g = (pl.program_id(0) % split) * tiles_per_part + i
            else:
                g = i
            row = jax.lax.broadcasted_iota(jnp.int32, (tile_rows, 128), 0)
            valid = valid & ((g * tile_rows + row) < r_total)

        # Pass 1: running max over classes in the input dtype (pure VPU;
        # bf16-native on v6e/v7x), single cast to f32.
        m = x_ref[0]
        for c in range(1, C):
            m = jnp.maximum(m, x_ref[c])
        m = m.astype(jnp.float32)

        # Pass 2 (fused): sum(exp(x - m)) and gather x_t via pure select.
        x0 = x_ref[0].astype(jnp.float32)
        sumexp = jnp.exp(x0 - m)
        x_t = jnp.where(t == 0, x0, 0.0)
        for c in range(1, C):
            xc = x_ref[c].astype(jnp.float32)
            sumexp = sumexp + jnp.exp(xc - m)
            x_t = jnp.where(t == c, xc, x_t)

        logpt = x_t - m - jnp.log(sumexp)         # log softmax at target
        logpt = jnp.where(valid, logpt, 0.0)      # single mask: CE=0 -> loss=0
        pt = jnp.exp(logpt)

        factor = focal_factor(pt)
        loss = -logpt if factor is None else -(factor * logpt)
        acc_ref[...] += loss                      # invalid px already 0

        @pl.when(i == pl.num_programs(1) - 1)
        def _():
            o_ref[...] = jnp.sum(acc_ref[...], axis=0, keepdims=True)

    return kernel


@functools.partial(jax.jit, static_argnames=("gamma", "size_average"))
def focal_loss_2d(logits, target, *, gamma=0.0, size_average=True):
    """FocalLoss2d.forward: logits (N, C, H, W); target (N, H, W) int."""
    N, C, H, W = logits.shape
    assert target.shape == (N, H, W), "logit/target spatial dims must match"
    assert C < IGNORE_INDEX, "class id 255 collides with ignore_index"
    # TODO(synk): bilinear-interpolate logits (align_corners=True) when the
    #             logit spatial dims differ from the target dims.
    # NOTE: the reference module stores `weight` but never uses it in forward.

    # Sanitize target dtype: avoid i64/bool lowering surprises, keep <=4 B/px.
    if target.dtype == jnp.bool_ or jnp.dtype(target.dtype).itemsize > 4:
        target = target.astype(jnp.int32)

    HW = H * W
    P = N * HW

    if HW % 128 == 0:                   # typical case: free reshape, no copy
        hw_pad = HW
        x = logits.reshape(N, C, hw_pad // 128, 128)
        t = target.reshape(N, hw_pad // 128, 128)
    else:
        # TODO(synk): fold this pad into the upstream producer; it is a full
        #             extra HBM round trip of the logits whenever hit.
        hw_pad = pl.cdiv(HW, 128) * 128
        x = jnp.pad(logits.reshape(N, C, HW),
                    ((0, 0), (0, 0), (0, hw_pad - HW)))
        x = x.reshape(N, C, hw_pad // 128, 128)
        t = jnp.pad(target.reshape(N, HW), ((0, 0), (0, hw_pad - HW)),
                    constant_values=IGNORE_INDEX)
        t = t.reshape(N, hw_pad // 128, 128)

    r_total = hw_pad // 128
    x_elt = jnp.dtype(x.dtype).itemsize
    t_elt = jnp.dtype(t.dtype).itemsize

    vmem_budget, vmem_limit, num_cores = _vmem_config()

    # --- tile sizing by bytes ---------------------------------------------
    # Counted: 2x double-buffered logits block, 2x double-buffered target
    # block, resident f32 accumulator, ~8 tile-sized f32 compiler temps.
    row_align = math.lcm(_sublane_multiple(x.dtype), _sublane_multiple(t.dtype))
    bytes_per_row = 128 * (2 * C * x_elt + 2 * t_elt + (1 + 8) * 4)
    max_rows = max(row_align, vmem_budget // bytes_per_row)
    max_rows = min(_MAX_TILE_ROWS, (max_rows // row_align) * row_align)
    tile_rows = min(max_rows, r_total)
    if tile_rows < r_total:
        tile_rows = max(row_align, (tile_rows // row_align) * row_align)
    num_tiles = pl.cdiv(r_total, tile_rows)
    r_blocks = num_tiles

    # --- v7x occupancy: give both TensorCores work when N == 1 -------------
    split = 2 if (num_cores >= 2 and N == 1 and num_tiles >= 2) else 1
    tiles_per_part = pl.cdiv(num_tiles, split)
    # True iff every processed tile lies fully inside the r_total rows
    # (no ragged last tile, no duplicated out-of-range tile from the split).
    full_cover = (split * tiles_per_part * tile_rows == r_total)

    if split == 1:
        x_map = lambda n, i: (n, 0, i, 0)
        t_map = lambda n, i: (n, i, 0)
    else:
        def _rb(p, i):  # clamp duplicate tail tiles in-bounds; kernel masks them
            return jnp.minimum((p % split) * tiles_per_part + i, r_blocks - 1)
        x_map = lambda p, i: (p // split, 0, _rb(p, i), 0)
        t_map = lambda p, i: (p // split, _rb(p, i), 0)
    o_map = lambda p, i: (p, 0, 0)

    cost = pl.CostEstimate(
        flops=int(6 * C * N * hw_pad),
        transcendentals=int((C + 2) * N * hw_pad),
        bytes_accessed=int(N * C * hw_pad * x_elt + N * hw_pad * t_elt
                           + N * split * 128 * 4),
    )

    partials = pl.pallas_call(
        _make_focal_kernel(C, tile_rows, r_total, float(gamma),
                           split, tiles_per_part, full_cover),
        out_shape=jax.ShapeDtypeStruct((N * split, 1, 128), jnp.float32),
        grid_spec=pltpu.PrefetchScalarGridSpec(
            num_scalar_prefetch=0,
            grid=(N * split, tiles_per_part),
            in_specs=[
                pl.BlockSpec((pl.Squeezed(), C, tile_rows, 128), x_map),
                pl.BlockSpec((pl.Squeezed(), tile_rows, 128), t_map),
            ],
            out_specs=pl.BlockSpec((pl.Squeezed(), 1, 128), o_map),
            scratch_shapes=[pltpu.VMEM((tile_rows, 128), jnp.float32)],
        ),
        compiler_params=pltpu.CompilerParams(
            dimension_semantics=("parallel", "arbitrary"),
            vmem_limit_bytes=vmem_limit,
        ),
        cost_estimate=cost,
    )(x, t)

    s = jnp.sum(partials)
    # torch: reduction='none' then .mean() averages over ALL pixels (ignored
    # pixels contribute 0 to the numerator but count in the denominator).
    return s / P if size_average else s


def _reference(logits, target, gamma, size_average):
    """Pure-JAX reference mirroring the PyTorch forward."""
    x = logits.astype(jnp.float32)
    logp = jax.nn.log_softmax(x, axis=1)                          # (N,C,H,W)
    t = target.astype(jnp.int32)
    valid = t != IGNORE_INDEX
    t_safe = jnp.where(valid, t, 0)
    logpt = jnp.take_along_axis(logp, t_safe[:, None], axis=1)[:, 0]
    logpt = jnp.where(valid, logpt, 0.0)
    pt = jnp.exp(logpt)
    loss = -((1.0 - pt) ** gamma) * logpt
    loss = jnp.where(valid, loss, 0.0)
    return loss.mean() if size_average else loss.sum()


if __name__ == "__main__":
    key = jax.random.PRNGKey(0)
    k1, k2, k3 = jax.random.split(key, 3)

    N, C, H, W = 2, 4, 16, 16
    logits = jax.random.normal(k1, (N, C, H, W), dtype=jnp.float32)
    target = jax.random.randint(k2, (N, H, W), 0, C, dtype=jnp.int32)
    # sprinkle some ignored pixels (ignore_index=255)
    ignore_mask = jax.random.bernoulli(k3, 0.1, (N, H, W))
    target = jnp.where(ignore_mask, IGNORE_INDEX, target)

    # gamma = 2 (mean reduction)
    out = focal_loss_2d(logits, target, gamma=2.0, size_average=True)
    out = jax.block_until_ready(out)
    ref = _reference(logits, target, 2.0, True)
    assert jnp.allclose(out, ref, rtol=1e-5, atol=1e-5), (out, ref)

    # gamma = 0 (plain CE, sum reduction)
    out0 = focal_loss_2d(logits, target, gamma=0.0, size_average=False)
    out0 = jax.block_until_ready(out0)
    ref0 = _reference(logits, target, 0.0, False)
    assert jnp.allclose(out0, ref0, rtol=1e-5, atol=1e-5), (out0, ref0)

    print("KERNEL_OK")
</pallas_src>

<mosaic_0001>
module attributes {stable_mosaic.version = 11 : i64} {
  func.func @kernel(%arg0: i32, %arg1: i32, %arg2: memref<1x4x2x128xf32, #tpu.memory_space<vmem>>, %arg3: memref<1x2x128xi32, #tpu.memory_space<vmem>>, %arg4: memref<1x1x128xf32, #tpu.memory_space<vmem>>, %arg5: memref<2x128xf32, #tpu.memory_space<vmem>>) attributes {dimension_semantics = [#tpu.dimension_semantics<parallel>, #tpu.dimension_semantics<arbitrary>], iteration_bounds = array<i64: 2, 1>, scalar_prefetch = 0 : i64, scratch_operands = 1 : i64, tpu.core_type = #tpu.core_type<tc>, window_params = [{transform_indices = @transform_0, window_bounds = array<i64: 1, 4, 2, 128>}, {transform_indices = @transform_1, window_bounds = array<i64: 1, 2, 128>}, {transform_indices = @transform_2, window_bounds = array<i64: 1, 1, 128>}]} {
    %c0_i32 = arith.constant 0 : i32
    %0 = arith.cmpi eq, %arg1, %c0_i32 : i32
    %1 = arith.extui %0 : i1 to i32
    %c0_i32_0 = arith.constant 0 : i32
    %2 = arith.cmpi ne, %1, %c0_i32_0 : i32
    scf.if %2 {
      %cst_43 = arith.constant 0.000000e+00 : f32
      %70 = vector.broadcast %cst_43 : f32 to vector<2x128xf32>
      %c0_44 = arith.constant 0 : index
      %c0_45 = arith.constant 0 : index
      %71 = vector.load %arg5[%c0_44, %c0_45] : memref<2x128xf32, #tpu.memory_space<vmem>>, vector<2x128xf32>
      tpu.vector_store %arg5[%c0_44, %c0_45], %70 {strides = array<i32>} : memref<2x128xf32, #tpu.memory_space<vmem>>, vector<2x128xf32>,
    } else {
    }
    %c0 = arith.constant 0 : index
    %c0_1 = arith.constant 0 : index
    %c0_2 = arith.constant 0 : index
    %3 = vector.load %arg3[%c0, %c0_1, %c0_2] : memref<1x2x128xi32, #tpu.memory_space<vmem>>, vector<1x2x128xi32>
    %4 = vector.shape_cast %3 : vector<1x2x128xi32> to vector<2x128xi32>
    %c255_i32 = arith.constant 255 : i32
    %5 = vector.broadcast %c255_i32 : i32 to vector<2x128xi32>
    %6 = arith.cmpi ne, %4, %5 : vector<2x128xi32>
    %c0_3 = arith.constant 0 : index
    %c0_4 = arith.constant 0 : index
    %c0_5 = arith.constant 0 : index
    %c0_6 = arith.constant 0 : index
    %7 = vector.load %arg2[%c0_3, %c0_4, %c0_5, %c0_6] : memref<1x4x2x128xf32, #tpu.memory_space<vmem>>, vector<1x1x2x128xf32>
    %8 = vector.shape_cast %7 : vector<1x1x2x128xf32> to vector<2x128xf32>
    %c0_7 = arith.constant 0 : index
    %c1 = arith.constant 1 : index
    %c0_8 = arith.constant 0 : index
    %c0_9 = arith.constant 0 : index
    %9 = vector.load %arg2[%c0_7, %c1, %c0_8, %c0_9] : memref<1x4x2x128xf32, #tpu.memory_space<vmem>>, vector<1x1x2x128xf32>
    %10 = vector.shape_cast %9 : vector<1x1x2x128xf32> to vector<2x128xf32>
    %11 = arith.maximumf %8, %10 : vector<2x128xf32>
    %c0_10 = arith.constant 0 : index
    %c2 = arith.constant 2 : index
    %c0_11 = arith.constant 0 : index
    %c0_12 = arith.constant 0 : index
    %12 = vector.load %arg2[%c0_10, %c2, %c0_11, %c0_12] : memref<1x4x2x128xf32, #tpu.memory_space<vmem>>, vector<1x1x2x128xf32>
    %13 = vector.shape_cast %12 : vector<1x1x2x128xf32> to vector<2x128xf32>
    %14 = arith.maximumf %11, %13 : vector<2x128xf32>
    %c0_13 = arith.constant 0 : index
    %c3 = arith.constant 3 : index
    %c0_14 = arith.constant 0 : index
    %c0_15 = arith.constant 0 : index
    %15 = vector.load %arg2[%c0_13, %c3, %c0_14, %c0_15] : memref<1x4x2x128xf32, #tpu.memory_space<vmem>>, vector<1x1x2x128xf32>
    %16 = vector.shape_cast %15 : vector<1x1x2x128xf32> to vector<2x128xf32>
    %17 = arith.maximumf %14, %16 : vector<2x128xf32>
    %c0_16 = arith.constant 0 : index
    %c0_17 = arith.constant 0 : index
    %c0_18 = arith.constant 0 : index
    %c0_19 = arith.constant 0 : index
    %18 = vector.load %arg2[%c0_16, %c0_17, %c0_18, %c0_19] : memref<1x4x2x128xf32, #tpu.memory_space<vmem>>, vector<1x1x2x128xf32>
    %19 = vector.shape_cast %18 : vector<1x1x2x128xf32> to vector<2x128xf32>
    %20 = arith.subf %19, %17 : vector<2x128xf32>
    %21 = math.exp %20 : vector<2x128xf32>
    %c0_i32_20 = arith.constant 0 : i32
    %22 = vector.broadcast %c0_i32_20 : i32 to vector<2x128xi32>
    %23 = arith.cmpi eq, %4, %22 : vector<2x128xi32>
    %cst = arith.constant 0.000000e+00 : f32
    %24 = vector.broadcast %cst : f32 to vector<2x128xf32>
    %25 = arith.select %23, %19, %24 : vector<2x128xi1>, vector<2x128xf32>
    %c0_21 = arith.constant 0 : index
    %c1_22 = arith.constant 1 : index
    %c0_23 = arith.constant 0 : index
    %c0_24 = arith.constant 0 : index
    %26 = vector.load %arg2[%c0_21, %c1_22, %c0_23, %c0_24] : memref<1x4x2x128xf32, #tpu.memory_space<vmem>>, vector<1x1x2x128xf32>
    %27 = vector.shape_cast %26 : vector<1x1x2x128xf32> to vector<2x128xf32>
    %28 = arith.subf %27, %17 : vector<2x128xf32>
    %29 = math.exp %28 : vector<2x128xf32>
    %30 = arith.addf %21, %29 : vector<2x128xf32>
    %c1_i32 = arith.constant 1 : i32
    %31 = vector.broadcast %c1_i32 : i32 to vector<2x128xi32>
    %32 = arith.cmpi eq, %4, %31 : vector<2x128xi32>
    %33 = arith.select %32, %27, %25 : vector<2x128xi1>, vector<2x128xf32>
    %c0_25 = arith.constant 0 : index
    %c2_26 = arith.constant 2 : index
    %c0_27 = arith.constant 0 : index
    %c0_28 = arith.constant 0 : index
    %34 = vector.load %arg2[%c0_25, %c2_26, %c0_27, %c0_28] : memref<1x4x2x128xf32, #tpu.memory_space<vmem>>, vector<1x1x2x128xf32>
    %35 = vector.shape_cast %34 : vector<1x1x2x128xf32> to vector<2x128xf32>
    %36 = arith.subf %35, %17 : vector<2x128xf32>
    %37 = math.exp %36 : vector<2x128xf32>
    %38 = arith.addf %30, %37 : vector<2x128xf32>
    %c2_i32 = arith.constant 2 : i32
    %39 = vector.broadcast %c2_i32 : i32 to vector<2x128xi32>
    %40 = arith.cmpi eq, %4, %39 : vector<2x128xi32>
    %41 = arith.select %40, %35, %33 : vector<2x128xi1>, vector<2x128xf32>
    %c0_29 = arith.constant 0 : index
    %c3_30 = arith.constant 3 : index
    %c0_31 = arith.constant 0 : index
    %c0_32 = arith.constant 0 : index
    %42 = vector.load %arg2[%c0_29, %c3_30, %c0_31, %c0_32] : memref<1x4x2x128xf32, #tpu.memory_space<vmem>>, vector<1x1x2x128xf32>
    %43 = vector.shape_cast %42 : vector<1x1x2x128xf32> to vector<2x128xf32>
    %44 = arith.subf %43, %17 : vector<2x128xf32>
    %45 = math.exp %44 : vector<2x128xf32>
    %46 = arith.addf %38, %45 : vector<2x128xf32>
    %c3_i32 = arith.constant 3 : i32
    %47 = vector.broadcast %c3_i32 : i32 to vector<2x128xi32>
    %48 = arith.cmpi eq, %4, %47 : vector<2x128xi32>
    %49 = arith.select %48, %43, %41 : vector<2x128xi1>, vector<2x128xf32>
    %50 = arith.subf %49, %17 : vector<2x128xf32>
    %51 = math.log %46 : vector<2x128xf32>
    %52 = arith.subf %50, %51 : vector<2x128xf32>
    %cst_33 = arith.constant 0.000000e+00 : f32
    %53 = vector.broadcast %cst_33 : f32 to vector<2x128xf32>
    %54 = arith.select %6, %52, %53 : vector<2x128xi1>, vector<2x128xf32>
    %55 = math.exp %54 : vector<2x128xf32>
    %cst_34 = arith.constant 1.000000e+00 : f32
    %56 = vector.broadcast %cst_34 : f32 to vector<2x128xf32>
    %57 = arith.subf %56, %55 : vector<2x128xf32>
    %cst_35 = arith.constant 0.000000e+00 : f32
    %58 = vector.broadcast %cst_35 : f32 to vector<2x128xf32>
    %59 = arith.maximumf %57, %58 : vector<2x128xf32>
    %60 = arith.mulf %59, %59 : vector<2x128xf32>
    %61 = arith.mulf %60, %54 : vector<2x128xf32>
    %cst_36 = arith.constant 0.000000e+00 : f32
    %62 = vector.broadcast %cst_36 : f32 to vector<2x128xf32>
    %63 = arith.subf %62, %61 : vector<2x128xf32>
    %c0_37 = arith.constant 0 : index
    %c0_38 = arith.constant 0 : index
    %64 = vector.load %arg5[%c0_37, %c0_38] : memref<2x128xf32, #tpu.memory_space<vmem>>, vector<2x128xf32>
    %65 = arith.addf %64, %63 : vector<2x128xf32>
    %c0_39 = arith.constant 0 : index
    %c0_40 = arith.constant 0 : index
    %66 = vector.load %arg5[%c0_39, %c0_40] : memref<2x128xf32, #tpu.memory_space<vmem>>, vector<2x128xf32>
    tpu.vector_store %arg5[%c0_39, %c0_40], %65 {strides = array<i32>} : memref<2x128xf32, #tpu.memory_space<vmem>>, vector<2x128xf32>,
    %c0_i32_41 = arith.constant 0 : i32
    %67 = arith.cmpi eq, %arg1, %c0_i32_41 : i32
    %68 = arith.extui %67 : i1 to i32
    %c0_i32_42 = arith.constant 0 : i32
    %69 = arith.cmpi ne, %68, %c0_i32_42 : i32
    scf.if %69 {
      %c0_43 = arith.constant 0 : index
      %c0_44 = arith.constant 0 : index
      %70 = vector.load %arg5[%c0_43, %c0_44] : memref<2x128xf32, #tpu.memory_space<vmem>>, vector<2x128xf32>
      %cst_45 = arith.constant dense<0.000000e+00> : vector<128xf32>
      %71 = vector.multi_reduction <add>, %70, %cst_45 [0] : vector<2x128xf32> to vector<128xf32>
      %72 = vector.shape_cast %71 : vector<128xf32> to vector<1x128xf32>
      %c0_46 = arith.constant 0 : index
      %c0_47 = arith.constant 0 : index
      %c0_48 = arith.constant 0 : index
      %73 = vector.load %arg4[%c0_46, %c0_47, %c0_48] : memref<1x1x128xf32, #tpu.memory_space<vmem>>, vector<1x1x128xf32>
      %74 = vector.shape_cast %73 : vector<1x1x128xf32> to vector<1x128xf32>
      %75 = vector.shape_cast %72 : vector<1x128xf32> to vector<1x1x128xf32>
      tpu.vector_store %arg4[%c0_46, %c0_47, %c0_48], %75 {strides = array<i32>} : memref<1x1x128xf32, #tpu.memory_space<vmem>>, vector<1x1x128xf32>,
    } else {
    }
    return
  }
  func.func @transform_0(%arg0: i32, %arg1: i32) -> (i32, i32, i32, i32) {
    %c0_i32 = arith.constant 0 : i32
    %c0_i32_0 = arith.constant 0 : i32
    %c0_i32_1 = arith.constant 0 : i32
    return %arg0, %c0_i32, %arg1, %c0_i32_0 : i32, i32, i32, i32
  }
  func.func @transform_1(%arg0: i32, %arg1: i32) -> (i32, i32, i32) {
    %c0_i32 = arith.constant 0 : i32
    %c0_i32_0 = arith.constant 0 : i32
    return %arg0, %arg1, %c0_i32 : i32, i32, i32
  }
  func.func @transform_2(%arg0: i32, %arg1: i32) -> (i32, i32, i32) {
    %c0_i32 = arith.constant 0 : i32
    %c0_i32_0 = arith.constant 0 : i32
    %c0_i32_1 = arith.constant 0 : i32
    return %arg0, %c0_i32, %c0_i32_0 : i32, i32, i32
  }
}

</mosaic_0001>

<bundles_post_ra>
// kernel: focal_loss_2d.1
= control target key start
LH: loop header
LB: loop body
LE: loop exit
PB: predicated region body
PF: predicated region fallthrough
CT: control target
= control target key end

     0   :  { %s426_s9 = smov 0   ;;  %s428_s10 = smov 0   ;;  %s467_s0 = inlined_call_operand.vmem [shape: f32[2,4,2,128], index: 0, kind: input, shape index: {}]   ;;  %s468_s1 = inlined_call_operand.vmem [shape: s32[2,2,128], index: 1, kind: input, shape index: {}]   ;;  %s469_s2 = inlined_call_operand.vmem [shape: f32[2,1,128], index: 2, kind: output, shape index: {}]  }
   0x1   :  { %s430_s11 = smov 0  }
   0x2 LB: > { %s24_s12 = sadd.s32 1, %s404_s10  ;;  %p339_p0 = scmp.ge.s32.totalorder %s408_s11, 1  ;;  %s408_s11 = sphi %s430_s11, %s12_s11   ;;  %s404_s10 = sphi %s428_s10, %s471_s10   ;;  %s400_s9 = sphi %s426_s9, %s470_s9  }
   0x3   : > { %p26_p1 = scmp.ge.s32.totalorder %s24_s12, 2  ;;  %p143_p2 = scmp.lt.s32.totalorder %s408_s11, 3 }
   0x5   : > { %s473_s12 = smov (%p26_p1, %s24_s12), 0  ;;  %p144_p3 = pnand %p339_p0, %p143_p2 }
   0x6   : > { %p173_p4 = scmp.lt.s32.totalorder (!%p144_p3), %s400_s9, 1  ;;  %v410_v0 = vmov (!%p144_p3), 0.0   ;;  %vm250_vm5 = vcmask (!%p144_p3), 1041408  }
   0x7   : > { %147 = sbr.rel (%p144_p3) target bundleno = 109 (0x6d), region = 28  ;;  %195 = vst [vmem:[#allocation2] sm:$0x3] (!%p144_p3), %v410_v0 }
   0xe   : > { %s475_s9 = smov (!%p173_p4, %s400_s9), 1  ;;  %v243_v39 = vld [vmem:[#allocation2] sm:$0x3] }
   0xf   : > { %s348_s13 = sshll.u32 %s475_s9, 3  ;;  %s342_s17 = sshll.u32 %s475_s9, 1 }
  0x10   : > { %s180_s16 = scalar_lea.vmem %s467_s0, %s348_s13  ;;  %s187_s20 = scalar_lea.vmem %s468_s1, %s342_s17 }
  0x11   : > { %v198_v1 = vld [vmem:[%s180_s16] sm:$0x3]  ;;  %v343_v2 = vld [vmem:[%s180_s16 + $0x2] sm:$0x3]  ;;  %v344_v4 = vld [vmem:[%s180_s16 + $0x4] sm:$0x3]  ;;  %s190_s23 = scalar_lea.vmem %s469_s2, %s475_s9 }
  0x12   : > { %v201_v3 = vmax.f32 %v198_v1, %v343_v2  ;;  %v345_v5 = vld [vmem:[%s180_s16 + $0x6] sm:$0x3]  ;;  %v196_v16 = vld [vmem:[%s187_s20] sm:$0x3] }
  0x13   : > { %vm211_vm0 = vcmp.eq.s32.totalorder %v196_v16, 0  ;;  %vm217_vm1 = vcmp.eq.s32.totalorder %v196_v16, 1  ;;  %vm223_vm2 = vcmp.eq.s32.totalorder %v196_v16, 2  ;;  %vm229_vm3 = vcmp.eq.s32.totalorder %v196_v16, 3 }
  0x14   : > { %v204_v6 = vmax.f32 %v201_v3, %v344_v4  ;;  %v212_v23 = vsel %vm211_vm0, %v198_v1, 0.0  ;;  %vm197_vm4 = vcmp.ne.s32.totalorder %v196_v16, 255 }
  0x15   : > { %v218_v25 = vsel %vm217_vm1, %v343_v2, %v212_v23 }
  0x16   : > { %v207_v7 = vmax.f32 %v204_v6, %v345_v5  ;;  %v224_v26 = vsel %vm223_vm2, %v344_v4, %v218_v25 }
  0x17   : > { %v230_v27 = vsel %vm229_vm3, %v345_v5, %v224_v26 }
  0x18   : > { %v208_v8 = vsub.f32 %v198_v1, %v207_v7  ;;  %v213_v9 = vsub.f32 %v343_v2, %v207_v7  ;;  %v219_v10 = vsub.f32 %v344_v4, %v207_v7  ;;  %v225_v11 = vsub.f32 %v345_v5, %v207_v7 }
  0x19   : > { %v231_v28 = vsub.f32 %v230_v27, %v207_v7 }
  0x1a   : > { %v209_v12 = vmul.f32 1.442695, %v208_v8  ;;  %v214_v13 = vmul.f32 1.442695, %v213_v9  ;;  %v220_v14 = vmul.f32 1.442695, %v219_v10 }
  0x1b   : > { %v226_v15 = vmul.f32 1.442695, %v225_v11 }
  0x1c   : > { %374 = vpow2.f32 %v209_v12 }
  0x1d   : > { %376 = vpow2.f32 %v214_v13 }
  0x1e   : > { %378 = vpow2.f32 %v220_v14 }
  0x1f   : > { %380 = vpow2.f32 %v226_v15 }
  0x26   : > { %v375_v17 = vpop.eup %374 }
  0x27   : > { %v377_v18 = vpop.eup %376 }
  0x28   : > { %v379_v19 = vpop.eup %378  ;;  %v216_v20 = vadd.f32 %v377_v18, %v375_v17 }
  0x29   : > { %v381_v21 = vpop.eup %380 }
  0x2a   : > { %v222_v22 = vadd.f32 %v379_v19, %v216_v20 }
  0x2c   : > { %v228_v24 = vadd.f32 %v381_v21, %v222_v22 }
  0x2e   : > { %382 = vlog2.f32 %v228_v24 }
  0x38   : > { %v383_v29 = vpop.eup %382 }
  0x39   : > { %v233_v30 = vmul.f32 0.6931472, %v383_v29 }
  0x3b   : > { %v234_v31 = vsub.f32 %v231_v28, %v233_v30 }
  0x3d   : > { %v235_v32 = vsel %vm197_vm4, %v234_v31, 0.0 }
  0x3e   : > { %v236_v33 = vmul.f32 1.442695, %v235_v32 }
  0x40   : > { %384 = vpow2.f32 %v236_v33 }
  0x4a   : > { %v385_v34 = vpop.eup %384 }
  0x4b   : > { %v238_v35 = vsub.f32 1.0, %v385_v34 }
  0x4d   : > { %v239_v36 = vmax.f32 %v238_v35, 0.0 }
  0x4f   : > { %v240_v37 = vmul.f32 %v239_v36, %v239_v36 }
  0x51   : > { %v241_v38 = vmul.f32 %v240_v37, %v235_v32 }
  0x53   : > { %v242_v40 = vsub.f32 0.0, %v241_v38 }
  0x55   : > { %v244_v41 = vadd.f32 %v243_v39, %v242_v40 }
  0x57   : > { %245 = vst [vmem:[#allocation2] sm:$0x3] %v244_v41 }
  0x5e   : > { %v249_v42 = vld [vmem:[#allocation2] sm:$0x3] }
  0x5f   : > { %v251_v43 = vsel %vm250_vm5, %v249_v42, 0.0 }
  0x60   : > { %v252_v44 = vrot.slane %v251_v43, 4 }
  0x62   : > { %v253_v45 = vadd.f32 %v252_v44, %v251_v43 }
  0x64   : > { %v254_v46 = vrot.slane %v253_v45, 2 }
  0x66   : > { %v255_v47 = vadd.f32 %v254_v46, %v253_v45 }
  0x68   : > { %v256_v48 = vrot.slane %v255_v47, 1 }
  0x6a   : > { %v257_v49 = vadd.f32 %v256_v48, %v255_v47 }
  0x6c   : > { %258 = vst [vmem:[%s190_s23] sm:$0x1] %v257_v49 }
  0x6d PF: > { %s12_s11 = sadd.s32 1, %s408_s11   ;;  %s470_s9 = smov %s404_s10 }
  0x6e   : > { %p9_p5 = scmp.ge.s32.totalorder %s12_s11, 4   ;;  %s471_s10 = smov %s473_s12 }
  0x70   :  { %11 = sbr.rel (!%p9_p5) target bundleno = 2 (0x2), region = 72 }

</bundles_post_ra>
